<compile_context>
chip_gen: v5e
topology: v5e:2x2
jax: 0.10.0
libtpu: 0.0.40
codegen_flags: <defaults>
</compile_context>

<pallas_src>
import functools

import jax
import jax.numpy as jnp
from jax.experimental import pallas as pl
from jax.experimental.pallas import tpu as pltpu


def _round_up(x, m):
    return ((x + m - 1) // m) * m


# --------------- fused [LayerNorm ->] matmul -> bias [-> ReLU] kernel ---------------


def _linear_kernel(*refs, activation, fuse_ln, true_k, eps, use_scratch):
    # refs layout: x, w, b, [ln_g, ln_b], o, [acc]
    if fuse_ln:
        if use_scratch:
            x_ref, w_ref, b_ref, g_ref, be_ref, o_ref, acc_ref = refs
        else:
            x_ref, w_ref, b_ref, g_ref, be_ref, o_ref = refs
            acc_ref = None
    else:
        if use_scratch:
            x_ref, w_ref, b_ref, o_ref, acc_ref = refs
        else:
            x_ref, w_ref, b_ref, o_ref = refs
            acc_ref = None

    k = pl.program_id(2)
    # When the output is f32, accumulate straight into the resident output block
    # (its index_map ignores k) — no scratch, no final copy pass.
    acc = acc_ref if use_scratch else o_ref

    @pl.when(k == 0)
    def _init():
        acc[...] = jnp.zeros_like(acc)

    x = x_ref[...]
    if fuse_ln:
        # Whole row is in this single K block (guaranteed by the wrapper).
        # Padded columns are zero and have gamma=beta=0, so they normalize to 0.
        xf = x.astype(jnp.float32)
        inv_k = 1.0 / true_k
        mean = jnp.sum(xf, axis=-1, keepdims=True) * inv_k
        var = jnp.sum(xf * xf, axis=-1, keepdims=True) * inv_k - mean * mean
        xn = (xf - mean) * jax.lax.rsqrt(var + eps) * g_ref[...] + be_ref[...]
        x = xn.astype(w_ref.dtype)

    acc[...] += jnp.dot(x, w_ref[...], preferred_element_type=jnp.float32)

    @pl.when(k == pl.num_programs(2) - 1)
    def _finalize():
        out = acc[...] + b_ref[...]
        if activation == "relu":
            out = jnp.maximum(out, 0.0)
        o_ref[...] = out.astype(o_ref.dtype)


def pallas_linear(x, w, b, *, activation="none", out_dtype=jnp.bfloat16,
                  ln_scale=None, ln_bias=None, eps=1e-5):
    """o = act( [LN](x) @ w + b ).  x:[M,K], w:[K,N] (bf16), b:[N] -> [M,N]."""
    M, K = x.shape
    K2, N = w.shape
    assert K == K2 and b.shape == (N,)
    fuse_ln = ln_scale is not None

    if x.dtype != w.dtype:            # safety net; hot path already passes bf16
        x = x.astype(w.dtype)

    # Tile caps: 512/512/1024. bf16 double-buffered inputs (~4 MiB) + f32 acc
    # (1 MiB) stay far under v7x's 64 MiB VMEM; large enough to approach the HBM
    # roofline and amortize per-step pipeline overhead on v5e/v6e.
    tm = 512 if M > 512 else _round_up(M, 8)
    tn = 512 if N > 512 else _round_up(N, 128)
    tk = 1024 if K > 1024 else _round_up(K, 128)

    Mp, Kp, Np = _round_up(M, tm), _round_up(K, tk), _round_up(N, tn)
    if fuse_ln:
        assert Kp == tk, "LayerNorm fusion requires K to fit in one K tile"

    # Zero-pad to tile-aligned, lane-dense shapes (no-op at production sizes).
    xp = x if (Mp == M and Kp == K) else jnp.pad(x, ((0, Mp - M), (0, Kp - K)))
    wp = w if (Kp == K and Np == N) else jnp.pad(w, ((0, Kp - K), (0, Np - N)))
    bp = (b if Np == N else jnp.pad(b, (0, Np - N))).reshape(1, Np).astype(jnp.float32)

    in_specs = [
        pl.BlockSpec((tm, tk), lambda i, j, k: (i, k)),
        # TODO(synk): sweep pipeline_mode=pl.Buffered(3) on the weight spec if
        # profiling at large tk shows exposed DMA.
        pl.BlockSpec((tk, tn), lambda i, j, k: (k, j)),
        pl.BlockSpec((1, tn), lambda i, j, k: (0, j)),
    ]
    args = [xp, wp, bp]
    if fuse_ln:
        g = ln_scale if Kp == K else jnp.pad(ln_scale, (0, Kp - K))
        be = ln_bias if Kp == K else jnp.pad(ln_bias, (0, Kp - K))
        in_specs += [
            pl.BlockSpec((1, tk), lambda i, j, k: (0, k)),
            pl.BlockSpec((1, tk), lambda i, j, k: (0, k)),
        ]
        args += [g.reshape(1, Kp).astype(jnp.float32),
                 be.reshape(1, Kp).astype(jnp.float32)]

    use_scratch = out_dtype != jnp.float32
    scratch = [pltpu.VMEM((tm, tn), jnp.float32)] if use_scratch else []

    grid = (Mp // tm, Np // tn, Kp // tk)
    out = pl.pallas_call(
        functools.partial(_linear_kernel, activation=activation, fuse_ln=fuse_ln,
                          true_k=K, eps=eps, use_scratch=use_scratch),
        out_shape=jax.ShapeDtypeStruct((Mp, Np), out_dtype),
        grid_spec=pltpu.PrefetchScalarGridSpec(
            num_scalar_prefetch=0,
            grid=grid,
            in_specs=in_specs,
            out_specs=pl.BlockSpec((tm, tn), lambda i, j, k: (i, j)),
            scratch_shapes=scratch,
        ),
        compiler_params=pltpu.CompilerParams(
            dimension_semantics=("parallel", "parallel", "arbitrary"),
            vmem_limit_bytes=48 * 1024 * 1024,  # safe on v7x; raise on v5e/v6e
        ),
    )(*args)

    if Mp != M or Np != N:
        out = out[:M, :N]
    return out


# ----------------------- multi-head self-attention kernel -----------------------


def _attn_kernel(qkv_ref, o_ref, *, heads, head_dim, scale):
    """One batch element: qkv block is (S, 3*dim) = [Q | K | V], head-major inside
    each.  Writes the head-merged (S, dim) output directly (no relayout)."""
    qkv = qkv_ref[...]                         # bf16
    dim = heads * head_dim
    outs = []
    for h in range(heads):                     # static loop; tiny head count
        q = qkv[:, h * head_dim:(h + 1) * head_dim]
        k = qkv[:, dim + h * head_dim:dim + (h + 1) * head_dim]
        v = qkv[:, 2 * dim + h * head_dim:2 * dim + (h + 1) * head_dim]
        s = jax.lax.dot_general(
            q, k, dimension_numbers=(((1,), (1,)), ((), ())),
            preferred_element_type=jnp.float32) * scale            # (S, S) f32
        m = jnp.max(s, axis=-1, keepdims=True)
        p = jnp.exp(s - m)
        denom = jnp.sum(p, axis=-1, keepdims=True)
        p = p * pl.reciprocal(denom, approx=True)                  # EUP slot
        outs.append(jnp.dot(p.astype(v.dtype), v,
                            preferred_element_type=jnp.float32))   # (S, Dh)
    o_ref[...] = jnp.concatenate(outs, axis=-1).astype(o_ref.dtype)


def pallas_attention(qkv, heads):
    """qkv: [B, S, 3*dim] bf16 -> [B, S, dim] bf16 (heads merged), no masking."""
    B, S, threedim = qkv.shape
    dim = threedim // 3
    dh = dim // heads
    # TODO(synk): for long S / many heads, switch to a flash-style kernel with a
    # (B, H, q-tile) parallel grid, online-softmax scratch, and head packing when
    # Dh < 128 lanes; the stand-in also applies no padding/causal mask.
    return pl.pallas_call(
        functools.partial(_attn_kernel, heads=heads, head_dim=dh,
                          scale=1.0 / (dh ** 0.5)),
        out_shape=jax.ShapeDtypeStruct((B, S, dim), qkv.dtype),
        grid=(B,),
        in_specs=[pl.BlockSpec((None, S, threedim), lambda b: (b, 0, 0))],
        out_specs=pl.BlockSpec((None, S, dim), lambda b: (b, 0, 0)),
        compiler_params=pltpu.CompilerParams(dimension_semantics=("parallel",)),
    )(qkv)


# ------------- fused mean-pool + additional_linear_layer (wrapper head) -------------


def _pooled_head_kernel(x_ref, w_ref, b_ref, o_ref):
    x = x_ref[...].astype(jnp.float32)                  # (B, S, dim)
    pooled = jnp.mean(x, axis=1)                        # (B, dim)  (encoder 'mean')
    o = jnp.dot(pooled, w_ref[...], preferred_element_type=jnp.float32) + b_ref[...]
    o_ref[...] = o.astype(o_ref.dtype)


def pallas_pooled_head(x, w, b):
    """[B,S,dim] -> mean over S -> Linear(dim, out_dim), one kernel launch."""
    B, S, D = x.shape
    D2, N = w.shape
    assert D == D2 and b.shape == (N,)
    return pl.pallas_call(
        _pooled_head_kernel,
        out_shape=jax.ShapeDtypeStruct((B, N), jnp.float32),
        grid=(1,),
        in_specs=[
            pl.BlockSpec((B, S, D), lambda i: (0, 0, 0)),
            pl.BlockSpec((D, N), lambda i: (0, 0)),
            pl.BlockSpec((1, N), lambda i: (0, 0)),
        ],
        out_specs=pl.BlockSpec((B, N), lambda i: (0, 0)),
    )(x, w, b.reshape(1, N).astype(jnp.float32))


# ------------------------ stand-in transformer (glue) -----------------------


def make_params(key, vocab, seq, dim, heads, ffn, out_dim):
    ks = jax.random.split(key, 10)
    s = 0.02
    bf = jnp.bfloat16
    wq = jax.random.normal(ks[2], (dim, dim), jnp.float32) * s
    wk = jax.random.normal(ks[3], (dim, dim), jnp.float32) * s
    wv = jax.random.normal(ks[4], (dim, dim), jnp.float32) * s
    return {
        "tok_emb": jax.random.normal(ks[0], (vocab, dim), jnp.float32) * s,
        "pos_emb": jax.random.normal(ks[1], (seq, dim), jnp.float32) * s,
        # Fused Q|K|V projection, stored bf16; heads are head-major inside each
        # block so the attention kernel slices per-head columns with no transpose.
        "wqkv": jnp.concatenate([wq, wk, wv], axis=1).astype(bf),    # (dim, 3*dim)
        "bqkv": jnp.zeros((3 * dim,), jnp.float32),
        "wo": (jax.random.normal(ks[5], (dim, dim), jnp.float32) * s).astype(bf),
        "bo": jnp.zeros((dim,), jnp.float32),
        "w1": (jax.random.normal(ks[6], (dim, ffn), jnp.float32) * s).astype(bf),
        "b1": jnp.zeros((ffn,), jnp.float32),
        "w2": (jax.random.normal(ks[7], (ffn, dim), jnp.float32) * s).astype(bf),
        "b2": jnp.zeros((dim,), jnp.float32),
        "ln1_g": jnp.ones((dim,), jnp.float32),
        "ln1_b": jnp.zeros((dim,), jnp.float32),
        "ln2_g": jnp.ones((dim,), jnp.float32),
        "ln2_b": jnp.zeros((dim,), jnp.float32),
        # TransformerLinearWrapper.additional_linear_layer = nn.Linear(dim, out_dim)
        "w_add": jax.random.normal(ks[8], (dim, out_dim), jnp.float32) * s,
        "b_add": jax.random.normal(ks[9], (out_dim,), jnp.float32) * s,
    }


def transformer_encoder(params, tokens, heads):
    """Stand-in for `self.transformer(*args)`; returns [B, S, dim] hidden states."""
    B, S = tokens.shape
    dim = params["tok_emb"].shape[1]

    # Embeddings; residual/activation stream kept in bf16 (LN stats and matmul
    # accumulation stay f32 inside the kernels).
    x = jnp.take(params["tok_emb"], tokens, axis=0) + params["pos_emb"][None, :, :]
    x = x.astype(jnp.bfloat16)                                        # [B, S, dim]

    # --- self-attention block (pre-LN); LN fused into the QKV matmul prologue ---
    qkv = pallas_linear(x.reshape(B * S, dim), params["wqkv"], params["bqkv"],
                        ln_scale=params["ln1_g"], ln_bias=params["ln1_b"])
    attn = pallas_attention(qkv.reshape(B, S, 3 * dim), heads)        # [B, S, dim]
    attn = pallas_linear(attn.reshape(B * S, dim), params["wo"], params["bo"])
    x = x + attn.reshape(B, S, dim)

    # --- FFN block (pre-LN); LN + bias + ReLU fused into the w1 matmul ---
    h = pallas_linear(x.reshape(B * S, dim), params["w1"], params["b1"],
                      activation="relu",
                      ln_scale=params["ln2_g"], ln_bias=params["ln2_b"])
    # Final residual contribution in f32 (exercises the no-scratch accumulate-
    # into-o_ref path; also better numerics for the pooled head).
    h = pallas_linear(h, params["w2"], params["b2"], out_dtype=jnp.float32)
    x = x.astype(jnp.float32) + h.reshape(B, S, dim)
    return x                                                          # [B, S, dim] f32


@functools.partial(jax.jit, static_argnames=("heads",))
def transformer_linear_wrapper_forward(params, tokens, heads):
    """TransformerLinearWrapper.forward: transformer(...) then additional linear."""
    hidden = transformer_encoder(params, tokens, heads)               # [B, S, dim]
    # mean-pool (ParlAI reduction_type='mean') + additional_linear_layer, fused.
    return pallas_pooled_head(hidden, params["w_add"], params["b_add"])  # [B, out]


# ---------------------------------- main ------------------------------------

if __name__ == "__main__":
    B, S, DIM, HEADS, FFN, VOCAB, OUT_DIM = 2, 8, 32, 2, 64, 50, 16

    key = jax.random.PRNGKey(0)
    k_params, k_tok = jax.random.split(key)
    params = make_params(k_params, VOCAB, S, DIM, HEADS, FFN, OUT_DIM)
    tokens = jax.random.randint(k_tok, (B, S), 0, VOCAB, dtype=jnp.int32)

    out = transformer_linear_wrapper_forward(params, tokens, HEADS)
    out = jax.block_until_ready(out)
    assert out.shape == (B, OUT_DIM) and out.dtype == jnp.float32
    print("KERNEL_OK")
</pallas_src>

<mosaic_0001>
module attributes {stable_mosaic.version = 11 : i64} {
  func.func @_attn_kernel(%arg0: i32, %arg1: memref<1x8x96xbf16, #tpu.memory_space<vmem>>, %arg2: memref<1x8x32xbf16, #tpu.memory_space<vmem>>) attributes {dimension_semantics = [#tpu.dimension_semantics<parallel>], iteration_bounds = array<i64: 2>, scalar_prefetch = 0 : i64, scratch_operands = 0 : i64, tpu.core_type = #tpu.core_type<tc>, window_params = [{transform_indices = @transform_0, window_bounds = array<i64: 1, 8, 96>}, {transform_indices = @transform_1, window_bounds = array<i64: 1, 8, 32>}]} {
    %c0 = arith.constant 0 : index
    %c0_0 = arith.constant 0 : index
    %c0_1 = arith.constant 0 : index
    %0 = vector.load %arg1[%c0, %c0_0, %c0_1] : memref<1x8x96xbf16, #tpu.memory_space<vmem>>, vector<1x8x96xbf16>
    %1 = vector.shape_cast %0 : vector<1x8x96xbf16> to vector<8x96xbf16>
    %2 = vector.extract_strided_slice %1 {offsets = [0, 0], sizes = [8, 16], strides = [1, 1]} : vector<8x96xbf16> to vector<8x16xbf16>
    %3 = vector.extract_strided_slice %1 {offsets = [0, 32], sizes = [8, 16], strides = [1, 1]} : vector<8x96xbf16> to vector<8x16xbf16>
    %4 = vector.extract_strided_slice %1 {offsets = [0, 64], sizes = [8, 16], strides = [1, 1]} : vector<8x96xbf16> to vector<8x16xbf16>
    %cst = arith.constant dense<0.000000e+00> : vector<8x8xf32>
    %5 = tpu.matmul %2, %3, %cst {dimension_numbers = #tpu.dot_dimension_numbers<[1], [1], [0], [0], [0, 0, 1, 0], [], []>} : vector<8x16xbf16>, vector<8x16xbf16>, vector<8x8xf32> -> vector<8x8xf32>
    %cst_2 = arith.constant 2.500000e-01 : f32
    %6 = vector.broadcast %cst_2 : f32 to vector<8x8xf32>
    %7 = arith.mulf %5, %6 : vector<8x8xf32>
    %cst_3 = arith.constant dense<0xFF800000> : vector<8xf32>
    %8 = vector.multi_reduction <maximumf>, %7, %cst_3 [1] : vector<8x8xf32> to vector<8xf32>
    %9 = vector.shape_cast %8 : vector<8xf32> to vector<8x1xf32>
    %10 = vector.broadcast %9 : vector<8x1xf32> to vector<8x8xf32>
    %11 = arith.subf %7, %10 : vector<8x8xf32>
    %12 = math.exp %11 : vector<8x8xf32>
    %cst_4 = arith.constant dense<0.000000e+00> : vector<8xf32>
    %13 = vector.multi_reduction <add>, %12, %cst_4 [1] : vector<8x8xf32> to vector<8xf32>
    %14 = vector.shape_cast %13 : vector<8xf32> to vector<8x1xf32>
    %15 = tpu.reciprocal %14 {approx = true} : vector<8x1xf32> -> vector<8x1xf32>
    %16 = vector.broadcast %15 : vector<8x1xf32> to vector<8x8xf32>
    %17 = arith.mulf %12, %16 : vector<8x8xf32>
    %18 = arith.truncf %17 : vector<8x8xf32> to vector<8x8xbf16>
    %cst_5 = arith.constant dense<0.000000e+00> : vector<8x16xf32>
    %19 = tpu.matmul %18, %4, %cst_5 {dimension_numbers = #tpu.dot_dimension_numbers<[1], [0], [0], [1], [0, 0, 1, 1], [], []>} : vector<8x8xbf16>, vector<8x16xbf16>, vector<8x16xf32> -> vector<8x16xf32>
    %20 = vector.extract_strided_slice %1 {offsets = [0, 16], sizes = [8, 16], strides = [1, 1]} : vector<8x96xbf16> to vector<8x16xbf16>
    %21 = vector.extract_strided_slice %1 {offsets = [0, 48], sizes = [8, 16], strides = [1, 1]} : vector<8x96xbf16> to vector<8x16xbf16>
    %22 = vector.extract_strided_slice %1 {offsets = [0, 80], sizes = [8, 16], strides = [1, 1]} : vector<8x96xbf16> to vector<8x16xbf16>
    %cst_6 = arith.constant dense<0.000000e+00> : vector<8x8xf32>
    %23 = tpu.matmul %20, %21, %cst_6 {dimension_numbers = #tpu.dot_dimension_numbers<[1], [1], [0], [0], [0, 0, 1, 0], [], []>} : vector<8x16xbf16>, vector<8x16xbf16>, vector<8x8xf32> -> vector<8x8xf32>
    %cst_7 = arith.constant 2.500000e-01 : f32
    %24 = vector.broadcast %cst_7 : f32 to vector<8x8xf32>
    %25 = arith.mulf %23, %24 : vector<8x8xf32>
    %cst_8 = arith.constant dense<0xFF800000> : vector<8xf32>
    %26 = vector.multi_reduction <maximumf>, %25, %cst_8 [1] : vector<8x8xf32> to vector<8xf32>
    %27 = vector.shape_cast %26 : vector<8xf32> to vector<8x1xf32>
    %28 = vector.broadcast %27 : vector<8x1xf32> to vector<8x8xf32>
    %29 = arith.subf %25, %28 : vector<8x8xf32>
    %30 = math.exp %29 : vector<8x8xf32>
    %cst_9 = arith.constant dense<0.000000e+00> : vector<8xf32>
    %31 = vector.multi_reduction <add>, %30, %cst_9 [1] : vector<8x8xf32> to vector<8xf32>
    %32 = vector.shape_cast %31 : vector<8xf32> to vector<8x1xf32>
    %33 = tpu.reciprocal %32 {approx = true} : vector<8x1xf32> -> vector<8x1xf32>
    %34 = vector.broadcast %33 : vector<8x1xf32> to vector<8x8xf32>
    %35 = arith.mulf %30, %34 : vector<8x8xf32>
    %36 = arith.truncf %35 : vector<8x8xf32> to vector<8x8xbf16>
    %cst_10 = arith.constant dense<0.000000e+00> : vector<8x16xf32>
    %37 = tpu.matmul %36, %22, %cst_10 {dimension_numbers = #tpu.dot_dimension_numbers<[1], [0], [0], [1], [0, 0, 1, 1], [], []>} : vector<8x8xbf16>, vector<8x16xbf16>, vector<8x16xf32> -> vector<8x16xf32>
    %38 = tpu.concatenate %19, %37 in 1 : vector<8x16xf32>, vector<8x16xf32> -> vector<8x32xf32>
    %39 = arith.truncf %38 : vector<8x32xf32> to vector<8x32xbf16>
    %c0_11 = arith.constant 0 : index
    %c0_12 = arith.constant 0 : index
    %c0_13 = arith.constant 0 : index
    %40 = vector.load %arg2[%c0_11, %c0_12, %c0_13] : memref<1x8x32xbf16, #tpu.memory_space<vmem>>, vector<1x8x32xbf16>
    %41 = vector.shape_cast %40 : vector<1x8x32xbf16> to vector<8x32xbf16>
    %42 = vector.shape_cast %39 : vector<8x32xbf16> to vector<1x8x32xbf16>
    tpu.vector_store %arg2[%c0_11, %c0_12, %c0_13], %42 {strides = array<i32>} : memref<1x8x32xbf16, #tpu.memory_space<vmem>>, vector<1x8x32xbf16>,
    return
  }
  func.func @transform_0(%arg0: i32) -> (i32, i32, i32) {
    %c0_i32 = arith.constant 0 : i32
    %c0_i32_0 = arith.constant 0 : i32
    %c0_i32_1 = arith.constant 0 : i32
    return %arg0, %c0_i32, %c0_i32_0 : i32, i32, i32
  }
  func.func @transform_1(%arg0: i32) -> (i32, i32, i32) {
    %c0_i32 = arith.constant 0 : i32
    %c0_i32_0 = arith.constant 0 : i32
    %c0_i32_1 = arith.constant 0 : i32
    return %arg0, %c0_i32, %c0_i32_0 : i32, i32, i32
  }
}

module attributes {stable_mosaic.version = 11 : i64} {
  func.func @_linear_kernel(%arg0: i32, %arg1: i32, %arg2: i32, %arg3: memref<16x128xbf16, #tpu.memory_space<vmem>>, %arg4: memref<128x128xbf16, #tpu.memory_space<vmem>>, %arg5: memref<1x128xf32, #tpu.memory_space<vmem>>, %arg6: memref<16x128xbf16, #tpu.memory_space<vmem>>, %arg7: memref<16x128xf32, #tpu.memory_space<vmem>>) attributes {dimension_semantics = [#tpu.dimension_semantics<parallel>, #tpu.dimension_semantics<parallel>, #tpu.dimension_semantics<arbitrary>], iteration_bounds = array<i64: 1, 1, 1>, scalar_prefetch = 0 : i64, scratch_operands = 1 : i64, tpu.core_type = #tpu.core_type<tc>, window_params = [{transform_indices = @transform_0, window_bounds = array<i64: 16, 128>}, {transform_indices = @transform_1, window_bounds = array<i64: 128, 128>}, {transform_indices = @transform_2, window_bounds = array<i64: 1, 128>}, {transform_indices = @transform_3, window_bounds = array<i64: 16, 128>}]} {
    %c0_i32 = arith.constant 0 : i32
    %0 = arith.cmpi eq, %arg2, %c0_i32 : i32
    %1 = arith.extui %0 : i1 to i32
    %c0_i32_0 = arith.constant 0 : i32
    %2 = arith.cmpi ne, %1, %c0_i32_0 : i32
    scf.if %2 {
      %cst_10 = arith.constant 0.000000e+00 : f32
      %12 = vector.broadcast %cst_10 : f32 to vector<16x128xf32>
      %c0_11 = arith.constant 0 : index
      %c0_12 = arith.constant 0 : index
      %13 = vector.load %arg7[%c0_11, %c0_12] : memref<16x128xf32, #tpu.memory_space<vmem>>, vector<16x128xf32>
      tpu.vector_store %arg7[%c0_11, %c0_12], %12 {strides = array<i32>} : memref<16x128xf32, #tpu.memory_space<vmem>>, vector<16x128xf32>,
    } else {
    }
    %c0 = arith.constant 0 : index
    %c0_1 = arith.constant 0 : index
    %3 = vector.load %arg3[%c0, %c0_1] : memref<16x128xbf16, #tpu.memory_space<vmem>>, vector<16x128xbf16>
    %c0_2 = arith.constant 0 : index
    %c0_3 = arith.constant 0 : index
    %4 = vector.load %arg7[%c0_2, %c0_3] : memref<16x128xf32, #tpu.memory_space<vmem>>, vector<16x128xf32>
    %c0_4 = arith.constant 0 : index
    %c0_5 = arith.constant 0 : index
    %5 = vector.load %arg4[%c0_4, %c0_5] : memref<128x128xbf16, #tpu.memory_space<vmem>>, vector<128x128xbf16>
    %cst = arith.constant dense<0.000000e+00> : vector<16x128xf32>
    %6 = tpu.matmul %3, %5, %cst {dimension_numbers = #tpu.dot_dimension_numbers<[1], [0], [0], [1], [0, 0, 1, 1], [], []>} : vector<16x128xbf16>, vector<128x128xbf16>, vector<16x128xf32> -> vector<16x128xf32>
    %7 = arith.addf %4, %6 : vector<16x128xf32>
    %c0_6 = arith.constant 0 : index
    %c0_7 = arith.constant 0 : index
    %8 = vector.load %arg7[%c0_6, %c0_7] : memref<16x128xf32, #tpu.memory_space<vmem>>, vector<16x128xf32>
    tpu.vector_store %arg7[%c0_6, %c0_7], %7 {strides = array<i32>} : memref<16x128xf32, #tpu.memory_space<vmem>>, vector<16x128xf32>,
    %c0_i32_8 = arith.constant 0 : i32
    %9 = arith.cmpi eq, %arg2, %c0_i32_8 : i32
    %10 = arith.extui %9 : i1 to i32
    %c0_i32_9 = arith.constant 0 : i32
    %11 = arith.cmpi ne, %10, %c0_i32_9 : i32
    scf.if %11 {
      %c0_10 = arith.constant 0 : index
      %c0_11 = arith.constant 0 : index
      %12 = vector.load %arg7[%c0_10, %c0_11] : memref<16x128xf32, #tpu.memory_space<vmem>>, vector<16x128xf32>
      %c0_12 = arith.constant 0 : index
      %c0_13 = arith.constant 0 : index
      %13 = vector.load %arg5[%c0_12, %c0_13] : memref<1x128xf32, #tpu.memory_space<vmem>>, vector<1x128xf32>
      %14 = vector.broadcast %13 : vector<1x128xf32> to vector<16x128xf32>
      %15 = arith.addf %12, %14 : vector<16x128xf32>
      %16 = arith.truncf %15 : vector<16x128xf32> to vector<16x128xbf16>
      %c0_14 = arith.constant 0 : index
      %c0_15 = arith.constant 0 : index
      %17 = vector.load %arg6[%c0_14, %c0_15] : memref<16x128xbf16, #tpu.memory_space<vmem>>, vector<16x128xbf16>
      tpu.vector_store %arg6[%c0_14, %c0_15], %16 {strides = array<i32>} : memref<16x128xbf16, #tpu.memory_space<vmem>>, vector<16x128xbf16>,
    } else {
    }
    return
  }
  func.func @transform_0(%arg0: i32, %arg1: i32, %arg2: i32) -> (i32, i32) {
    %c0_i32 = arith.constant 0 : i32
    return %arg0, %arg2 : i32, i32
  }
  func.func @transform_1(%arg0: i32, %arg1: i32, %arg2: i32) -> (i32, i32) {
    %c0_i32 = arith.constant 0 : i32
    return %arg2, %arg1 : i32, i32
  }
  func.func @transform_2(%arg0: i32, %arg1: i32, %arg2: i32) -> (i32, i32) {
    %c0_i32 = arith.constant 0 : i32
    %c0_i32_0 = arith.constant 0 : i32
    return %c0_i32, %arg1 : i32, i32
  }
  func.func @transform_3(%arg0: i32, %arg1: i32, %arg2: i32) -> (i32, i32) {
    %c0_i32 = arith.constant 0 : i32
    return %arg0, %arg1 : i32, i32
  }
}

module attributes {stable_mosaic.version = 11 : i64} {
  func.func @_linear_kernel(%arg0: i32, %arg1: i32, %arg2: i32, %arg3: memref<16x128xbf16, #tpu.memory_space<vmem>>, %arg4: memref<128x128xbf16, #tpu.memory_space<vmem>>, %arg5: memref<1x128xf32, #tpu.memory_space<vmem>>, %arg6: memref<1x128xf32, #tpu.memory_space<vmem>>, %arg7: memref<1x128xf32, #tpu.memory_space<vmem>>, %arg8: memref<16x128xbf16, #tpu.memory_space<vmem>>, %arg9: memref<16x128xf32, #tpu.memory_space<vmem>>) attributes {dimension_semantics = [#tpu.dimension_semantics<parallel>, #tpu.dimension_semantics<parallel>, #tpu.dimension_semantics<arbitrary>], iteration_bounds = array<i64: 1, 1, 1>, scalar_prefetch = 0 : i64, scratch_operands = 1 : i64, tpu.core_type = #tpu.core_type<tc>, window_params = [{transform_indices = @transform_0, window_bounds = array<i64: 16, 128>}, {transform_indices = @transform_1, window_bounds = array<i64: 128, 128>}, {transform_indices = @transform_2, window_bounds = array<i64: 1, 128>}, {transform_indices = @transform_3, window_bounds = array<i64: 1, 128>}, {transform_indices = @transform_4, window_bounds = array<i64: 1, 128>}, {transform_indices = @transform_5, window_bounds = array<i64: 16, 128>}]} {
    %c0_i32 = arith.constant 0 : i32
    %0 = arith.cmpi eq, %arg2, %c0_i32 : i32
    %1 = arith.extui %0 : i1 to i32
    %c0_i32_0 = arith.constant 0 : i32
    %2 = arith.cmpi ne, %1, %c0_i32_0 : i32
    scf.if %2 {
      %cst_19 = arith.constant 0.000000e+00 : f32
      %38 = vector.broadcast %cst_19 : f32 to vector<16x128xf32>
      %c0_20 = arith.constant 0 : index
      %c0_21 = arith.constant 0 : index
      %39 = vector.load %arg9[%c0_20, %c0_21] : memref<16x128xf32, #tpu.memory_space<vmem>>, vector<16x128xf32>
      tpu.vector_store %arg9[%c0_20, %c0_21], %38 {strides = array<i32>} : memref<16x128xf32, #tpu.memory_space<vmem>>, vector<16x128xf32>,
    } else {
    }
    %c0 = arith.constant 0 : index
    %c0_1 = arith.constant 0 : index
    %3 = vector.load %arg3[%c0, %c0_1] : memref<16x128xbf16, #tpu.memory_space<vmem>>, vector<16x128xbf16>
    %4 = arith.extf %3 : vector<16x128xbf16> to vector<16x128xf32>
    %cst = arith.constant dense<0.000000e+00> : vector<16xf32>
    %5 = vector.multi_reduction <add>, %4, %cst [1] : vector<16x128xf32> to vector<16xf32>
    %6 = vector.shape_cast %5 : vector<16xf32> to vector<16x1xf32>
    %cst_2 = arith.constant 3.125000e-02 : f32
    %7 = vector.broadcast %cst_2 : f32 to vector<16x1xf32>
    %8 = arith.mulf %6, %7 : vector<16x1xf32>
    %9 = arith.mulf %4, %4 : vector<16x128xf32>
    %cst_3 = arith.constant dense<0.000000e+00> : vector<16xf32>
    %10 = vector.multi_reduction <add>, %9, %cst_3 [1] : vector<16x128xf32> to vector<16xf32>
    %11 = vector.shape_cast %10 : vector<16xf32> to vector<16x1xf32>
    %cst_4 = arith.constant 3.125000e-02 : f32
    %12 = vector.broadcast %cst_4 : f32 to vector<16x1xf32>
    %13 = arith.mulf %11, %12 : vector<16x1xf32>
    %14 = arith.mulf %8, %8 : vector<16x1xf32>
    %15 = arith.subf %13, %14 : vector<16x1xf32>
    %16 = vector.broadcast %8 : vector<16x1xf32> to vector<16x128xf32>
    %17 = arith.subf %4, %16 : vector<16x128xf32>
    %cst_5 = arith.constant 9.99999974E-6 : f32
    %18 = vector.broadcast %cst_5 : f32 to vector<16x1xf32>
    %19 = arith.addf %15, %18 : vector<16x1xf32>
    %20 = math.rsqrt %19 : vector<16x1xf32>
    %21 = vector.broadcast %20 : vector<16x1xf32> to vector<16x128xf32>
    %22 = arith.mulf %17, %21 : vector<16x128xf32>
    %c0_6 = arith.constant 0 : index
    %c0_7 = arith.constant 0 : index
    %23 = vector.load %arg6[%c0_6, %c0_7] : memref<1x128xf32, #tpu.memory_space<vmem>>, vector<1x128xf32>
    %24 = vector.broadcast %23 : vector<1x128xf32> to vector<16x128xf32>
    %25 = arith.mulf %22, %24 : vector<16x128xf32>
    %c0_8 = arith.constant 0 : index
    %c0_9 = arith.constant 0 : index
    %26 = vector.load %arg7[%c0_8, %c0_9] : memref<1x128xf32, #tpu.memory_space<vmem>>, vector<1x128xf32>
    %27 = vector.broadcast %26 : vector<1x128xf32> to vector<16x128xf32>
    %28 = arith.addf %25, %27 : vector<16x128xf32>
    %29 = arith.truncf %28 : vector<16x128xf32> to vector<16x128xbf16>
    %c0_10 = arith.constant 0 : index
    %c0_11 = arith.constant 0 : index
    %30 = vector.load %arg9[%c0_10, %c0_11] : memref<16x128xf32, #tpu.memory_space<vmem>>, vector<16x128xf32>
    %c0_12 = arith.constant 0 : index
    %c0_13 = arith.constant 0 : index
    %31 = vector.load %arg4[%c0_12, %c0_13] : memref<128x128xbf16, #tpu.memory_space<vmem>>, vector<128x128xbf16>
    %cst_14 = arith.constant dense<0.000000e+00> : vector<16x128xf32>
    %32 = tpu.matmul %29, %31, %cst_14 {dimension_numbers = #tpu.dot_dimension_numbers<[1], [0], [0], [1], [0, 0, 1, 1], [], []>} : vector<16x128xbf16>, vector<128x128xbf16>, vector<16x128xf32> -> vector<16x128xf32>
    %33 = arith.addf %30, %32 : vector<16x128xf32>
    %c0_15 = arith.constant 0 : index
    %c0_16 = arith.constant 0 : index
    %34 = vector.load %arg9[%c0_15, %c0_16] : memref<16x128xf32, #tpu.memory_space<vmem>>, vector<16x128xf32>
    tpu.vector_store %arg9[%c0_15, %c0_16], %33 {strides = array<i32>} : memref<16x128xf32, #tpu.memory_space<vmem>>, vector<16x128xf32>,
    %c0_i32_17 = arith.constant 0 : i32
    %35 = arith.cmpi eq, %arg2, %c0_i32_17 : i32
    %36 = arith.extui %35 : i1 to i32
    %c0_i32_18 = arith.constant 0 : i32
    %37 = arith.cmpi ne, %36, %c0_i32_18 : i32
    scf.if %37 {
      %c0_19 = arith.constant 0 : index
      %c0_20 = arith.constant 0 : index
      %38 = vector.load %arg9[%c0_19, %c0_20] : memref<16x128xf32, #tpu.memory_space<vmem>>, vector<16x128xf32>
      %c0_21 = arith.constant 0 : index
      %c0_22 = arith.constant 0 : index
      %39 = vector.load %arg5[%c0_21, %c0_22] : memref<1x128xf32, #tpu.memory_space<vmem>>, vector<1x128xf32>
      %40 = vector.broadcast %39 : vector<1x128xf32> to vector<16x128xf32>
      %41 = arith.addf %38, %40 : vector<16x128xf32>
      %42 = arith.truncf %41 : vector<16x128xf32> to vector<16x128xbf16>
      %c0_23 = arith.constant 0 : index
      %c0_24 = arith.constant 0 : index
      %43 = vector.load %arg8[%c0_23, %c0_24] : memref<16x128xbf16, #tpu.memory_space<vmem>>, vector<16x128xbf16>
      tpu.vector_store %arg8[%c0_23, %c0_24], %42 {strides = array<i32>} : memref<16x128xbf16, #tpu.memory_space<vmem>>, vector<16x128xbf16>,
    } else {
    }
    return
  }
  func.func @transform_0(%arg0: i32, %arg1: i32, %arg2: i32) -> (i32, i32) {
    %c0_i32 = arith.constant 0 : i32
    return %arg0, %arg2 : i32, i32
  }
  func.func @transform_1(%arg0: i32, %arg1: i32, %arg2: i32) -> (i32, i32) {
    %c0_i32 = arith.constant 0 : i32
    return %arg2, %arg1 : i32, i32
  }
  func.func @transform_2(%arg0: i32, %arg1: i32, %arg2: i32) -> (i32, i32) {
    %c0_i32 = arith.constant 0 : i32
    %c0_i32_0 = arith.constant 0 : i32
    return %c0_i32, %arg1 : i32, i32
  }
  func.func @transform_3(%arg0: i32, %arg1: i32, %arg2: i32) -> (i32, i32) {
    %c0_i32 = arith.constant 0 : i32
    %c0_i32_0 = arith.constant 0 : i32
    return %c0_i32, %arg2 : i32, i32
  }
  func.func @transform_4(%arg0: i32, %arg1: i32, %arg2: i32) -> (i32, i32) {
    %c0_i32 = arith.constant 0 : i32
    %c0_i32_0 = arith.constant 0 : i32
    return %c0_i32, %arg2 : i32, i32
  }
  func.func @transform_5(%arg0: i32, %arg1: i32, %arg2: i32) -> (i32, i32) {
    %c0_i32 = arith.constant 0 : i32
    return %arg0, %arg1 : i32, i32
  }
}

module attributes {stable_mosaic.version = 11 : i64} {
  func.func @_linear_kernel(%arg0: i32, %arg1: i32, %arg2: i32, %arg3: memref<16x128xbf16, #tpu.memory_space<vmem>>, %arg4: memref<128x128xbf16, #tpu.memory_space<vmem>>, %arg5: memref<1x128xf32, #tpu.memory_space<vmem>>, %arg6: memref<1x128xf32, #tpu.memory_space<vmem>>, %arg7: memref<1x128xf32, #tpu.memory_space<vmem>>, %arg8: memref<16x128xbf16, #tpu.memory_space<vmem>>, %arg9: memref<16x128xf32, #tpu.memory_space<vmem>>) attributes {dimension_semantics = [#tpu.dimension_semantics<parallel>, #tpu.dimension_semantics<parallel>, #tpu.dimension_semantics<arbitrary>], iteration_bounds = array<i64: 1, 1, 1>, scalar_prefetch = 0 : i64, scratch_operands = 1 : i64, tpu.core_type = #tpu.core_type<tc>, window_params = [{transform_indices = @transform_0, window_bounds = array<i64: 16, 128>}, {transform_indices = @transform_1, window_bounds = array<i64: 128, 128>}, {transform_indices = @transform_2, window_bounds = array<i64: 1, 128>}, {transform_indices = @transform_3, window_bounds = array<i64: 1, 128>}, {transform_indices = @transform_4, window_bounds = array<i64: 1, 128>}, {transform_indices = @transform_5, window_bounds = array<i64: 16, 128>}]} {
    %c0_i32 = arith.constant 0 : i32
    %0 = arith.cmpi eq, %arg2, %c0_i32 : i32
    %1 = arith.extui %0 : i1 to i32
    %c0_i32_0 = arith.constant 0 : i32
    %2 = arith.cmpi ne, %1, %c0_i32_0 : i32
    scf.if %2 {
      %cst_19 = arith.constant 0.000000e+00 : f32
      %38 = vector.broadcast %cst_19 : f32 to vector<16x128xf32>
      %c0_20 = arith.constant 0 : index
      %c0_21 = arith.constant 0 : index
      %39 = vector.load %arg9[%c0_20, %c0_21] : memref<16x128xf32, #tpu.memory_space<vmem>>, vector<16x128xf32>
      tpu.vector_store %arg9[%c0_20, %c0_21], %38 {strides = array<i32>} : memref<16x128xf32, #tpu.memory_space<vmem>>, vector<16x128xf32>,
    } else {
    }
    %c0 = arith.constant 0 : index
    %c0_1 = arith.constant 0 : index
    %3 = vector.load %arg3[%c0, %c0_1] : memref<16x128xbf16, #tpu.memory_space<vmem>>, vector<16x128xbf16>
    %4 = arith.extf %3 : vector<16x128xbf16> to vector<16x128xf32>
    %cst = arith.constant dense<0.000000e+00> : vector<16xf32>
    %5 = vector.multi_reduction <add>, %4, %cst [1] : vector<16x128xf32> to vector<16xf32>
    %6 = vector.shape_cast %5 : vector<16xf32> to vector<16x1xf32>
    %cst_2 = arith.constant 3.125000e-02 : f32
    %7 = vector.broadcast %cst_2 : f32 to vector<16x1xf32>
    %8 = arith.mulf %6, %7 : vector<16x1xf32>
    %9 = arith.mulf %4, %4 : vector<16x128xf32>
    %cst_3 = arith.constant dense<0.000000e+00> : vector<16xf32>
    %10 = vector.multi_reduction <add>, %9, %cst_3 [1] : vector<16x128xf32> to vector<16xf32>
    %11 = vector.shape_cast %10 : vector<16xf32> to vector<16x1xf32>
    %cst_4 = arith.constant 3.125000e-02 : f32
    %12 = vector.broadcast %cst_4 : f32 to vector<16x1xf32>
    %13 = arith.mulf %11, %12 : vector<16x1xf32>
    %14 = arith.mulf %8, %8 : vector<16x1xf32>
    %15 = arith.subf %13, %14 : vector<16x1xf32>
    %16 = vector.broadcast %8 : vector<16x1xf32> to vector<16x128xf32>
    %17 = arith.subf %4, %16 : vector<16x128xf32>
    %cst_5 = arith.constant 9.99999974E-6 : f32
    %18 = vector.broadcast %cst_5 : f32 to vector<16x1xf32>
    %19 = arith.addf %15, %18 : vector<16x1xf32>
    %20 = math.rsqrt %19 : vector<16x1xf32>
    %21 = vector.broadcast %20 : vector<16x1xf32> to vector<16x128xf32>
    %22 = arith.mulf %17, %21 : vector<16x128xf32>
    %c0_6 = arith.constant 0 : index
    %c0_7 = arith.constant 0 : index
    %23 = vector.load %arg6[%c0_6, %c0_7] : memref<1x128xf32, #tpu.memory_space<vmem>>, vector<1x128xf32>
    %24 = vector.broadcast %23 : vector<1x128xf32> to vector<16x128xf32>
    %25 = arith.mulf %22, %24 : vector<16x128xf32>
    %c0_8 = arith.constant 0 : index
    %c0_9 = arith.constant 0 : index
    %26 = vector.load %arg7[%c0_8, %c0_9] : memref<1x128xf32, #tpu.memory_space<vmem>>, vector<1x128xf32>
    %27 = vector.broadcast %26 : vector<1x128xf32> to vector<16x128xf32>
    %28 = arith.addf %25, %27 : vector<16x128xf32>
    %29 = arith.truncf %28 : vector<16x128xf32> to vector<16x128xbf16>
    %c0_10 = arith.constant 0 : index
    %c0_11 = arith.constant 0 : index
    %30 = vector.load %arg9[%c0_10, %c0_11] : memref<16x128xf32, #tpu.memory_space<vmem>>, vector<16x128xf32>
    %c0_12 = arith.constant 0 : index
    %c0_13 = arith.constant 0 : index
    %31 = vector.load %arg4[%c0_12, %c0_13] : memref<128x128xbf16, #tpu.memory_space<vmem>>, vector<128x128xbf16>
    %cst_14 = arith.constant dense<0.000000e+00> : vector<16x128xf32>
    %32 = tpu.matmul %29, %31, %cst_14 {dimension_numbers = #tpu.dot_dimension_numbers<[1], [0], [0], [1], [0, 0, 1, 1], [], []>} : vector<16x128xbf16>, vector<128x128xbf16>, vector<16x128xf32> -> vector<16x128xf32>
    %33 = arith.addf %30, %32 : vector<16x128xf32>
    %c0_15 = arith.constant 0 : index
    %c0_16 = arith.constant 0 : index
    %34 = vector.load %arg9[%c0_15, %c0_16] : memref<16x128xf32, #tpu.memory_space<vmem>>, vector<16x128xf32>
    tpu.vector_store %arg9[%c0_15, %c0_16], %33 {strides = array<i32>} : memref<16x128xf32, #tpu.memory_space<vmem>>, vector<16x128xf32>,
    %c0_i32_17 = arith.constant 0 : i32
    %35 = arith.cmpi eq, %arg2, %c0_i32_17 : i32
    %36 = arith.extui %35 : i1 to i32
    %c0_i32_18 = arith.constant 0 : i32
    %37 = arith.cmpi ne, %36, %c0_i32_18 : i32
    scf.if %37 {
      %c0_19 = arith.constant 0 : index
      %c0_20 = arith.constant 0 : index
      %38 = vector.load %arg9[%c0_19, %c0_20] : memref<16x128xf32, #tpu.memory_space<vmem>>, vector<16x128xf32>
      %c0_21 = arith.constant 0 : index
      %c0_22 = arith.constant 0 : index
      %39 = vector.load %arg5[%c0_21, %c0_22] : memref<1x128xf32, #tpu.memory_space<vmem>>, vector<1x128xf32>
      %40 = vector.broadcast %39 : vector<1x128xf32> to vector<16x128xf32>
      %41 = arith.addf %38, %40 : vector<16x128xf32>
      %cst_23 = arith.constant 0.000000e+00 : f32
      %42 = vector.broadcast %cst_23 : f32 to vector<16x128xf32>
      %43 = arith.maximumf %41, %42 : vector<16x128xf32>
      %44 = arith.truncf %43 : vector<16x128xf32> to vector<16x128xbf16>
      %c0_24 = arith.constant 0 : index
      %c0_25 = arith.constant 0 : index
      %45 = vector.load %arg8[%c0_24, %c0_25] : memref<16x128xbf16, #tpu.memory_space<vmem>>, vector<16x128xbf16>
      tpu.vector_store %arg8[%c0_24, %c0_25], %44 {strides = array<i32>} : memref<16x128xbf16, #tpu.memory_space<vmem>>, vector<16x128xbf16>,
    } else {
    }
    return
  }
  func.func @transform_0(%arg0: i32, %arg1: i32, %arg2: i32) -> (i32, i32) {
    %c0_i32 = arith.constant 0 : i32
    return %arg0, %arg2 : i32, i32
  }
  func.func @transform_1(%arg0: i32, %arg1: i32, %arg2: i32) -> (i32, i32) {
    %c0_i32 = arith.constant 0 : i32
    return %arg2, %arg1 : i32, i32
  }
  func.func @transform_2(%arg0: i32, %arg1: i32, %arg2: i32) -> (i32, i32) {
    %c0_i32 = arith.constant 0 : i32
    %c0_i32_0 = arith.constant 0 : i32
    return %c0_i32, %arg1 : i32, i32
  }
  func.func @transform_3(%arg0: i32, %arg1: i32, %arg2: i32) -> (i32, i32) {
    %c0_i32 = arith.constant 0 : i32
    %c0_i32_0 = arith.constant 0 : i32
    return %c0_i32, %arg2 : i32, i32
  }
  func.func @transform_4(%arg0: i32, %arg1: i32, %arg2: i32) -> (i32, i32) {
    %c0_i32 = arith.constant 0 : i32
    %c0_i32_0 = arith.constant 0 : i32
    return %c0_i32, %arg2 : i32, i32
  }
  func.func @transform_5(%arg0: i32, %arg1: i32, %arg2: i32) -> (i32, i32) {
    %c0_i32 = arith.constant 0 : i32
    return %arg0, %arg1 : i32, i32
  }
}

module attributes {stable_mosaic.version = 11 : i64} {
  func.func @_linear_kernel(%arg0: i32, %arg1: i32, %arg2: i32, %arg3: memref<16x128xbf16, #tpu.memory_space<vmem>>, %arg4: memref<128x128xbf16, #tpu.memory_space<vmem>>, %arg5: memref<1x128xf32, #tpu.memory_space<vmem>>, %arg6: memref<16x128xf32, #tpu.memory_space<vmem>>) attributes {dimension_semantics = [#tpu.dimension_semantics<parallel>, #tpu.dimension_semantics<parallel>, #tpu.dimension_semantics<arbitrary>], iteration_bounds = array<i64: 1, 1, 1>, scalar_prefetch = 0 : i64, scratch_operands = 0 : i64, tpu.core_type = #tpu.core_type<tc>, window_params = [{transform_indices = @transform_0, window_bounds = array<i64: 16, 128>}, {transform_indices = @transform_1, window_bounds = array<i64: 128, 128>}, {transform_indices = @transform_2, window_bounds = array<i64: 1, 128>}, {transform_indices = @transform_3, window_bounds = array<i64: 16, 128>}]} {
    %c0_i32 = arith.constant 0 : i32
    %0 = arith.cmpi eq, %arg2, %c0_i32 : i32
    %1 = arith.extui %0 : i1 to i32
    %c0_i32_0 = arith.constant 0 : i32
    %2 = arith.cmpi ne, %1, %c0_i32_0 : i32
    scf.if %2 {
      %cst_10 = arith.constant 0.000000e+00 : f32
      %12 = vector.broadcast %cst_10 : f32 to vector<16x128xf32>
      %c0_11 = arith.constant 0 : index
      %c0_12 = arith.constant 0 : index
      %13 = vector.load %arg6[%c0_11, %c0_12] : memref<16x128xf32, #tpu.memory_space<vmem>>, vector<16x128xf32>
      tpu.vector_store %arg6[%c0_11, %c0_12], %12 {strides = array<i32>} : memref<16x128xf32, #tpu.memory_space<vmem>>, vector<16x128xf32>,
    } else {
    }
    %c0 = arith.constant 0 : index
    %c0_1 = arith.constant 0 : index
    %3 = vector.load %arg3[%c0, %c0_1] : memref<16x128xbf16, #tpu.memory_space<vmem>>, vector<16x128xbf16>
    %c0_2 = arith.constant 0 : index
    %c0_3 = arith.constant 0 : index
    %4 = vector.load %arg6[%c0_2, %c0_3] : memref<16x128xf32, #tpu.memory_space<vmem>>, vector<16x128xf32>
    %c0_4 = arith.constant 0 : index
    %c0_5 = arith.constant 0 : index
    %5 = vector.load %arg4[%c0_4, %c0_5] : memref<128x128xbf16, #tpu.memory_space<vmem>>, vector<128x128xbf16>
    %cst = arith.constant dense<0.000000e+00> : vector<16x128xf32>
    %6 = tpu.matmul %3, %5, %cst {dimension_numbers = #tpu.dot_dimension_numbers<[1], [0], [0], [1], [0, 0, 1, 1], [], []>} : vector<16x128xbf16>, vector<128x128xbf16>, vector<16x128xf32> -> vector<16x128xf32>
    %7 = arith.addf %4, %6 : vector<16x128xf32>
    %c0_6 = arith.constant 0 : index
    %c0_7 = arith.constant 0 : index
    %8 = vector.load %arg6[%c0_6, %c0_7] : memref<16x128xf32, #tpu.memory_space<vmem>>, vector<16x128xf32>
    tpu.vector_store %arg6[%c0_6, %c0_7], %7 {strides = array<i32>} : memref<16x128xf32, #tpu.memory_space<vmem>>, vector<16x128xf32>,
    %c0_i32_8 = arith.constant 0 : i32
    %9 = arith.cmpi eq, %arg2, %c0_i32_8 : i32
    %10 = arith.extui %9 : i1 to i32
    %c0_i32_9 = arith.constant 0 : i32
    %11 = arith.cmpi ne, %10, %c0_i32_9 : i32
    scf.if %11 {
      %c0_10 = arith.constant 0 : index
      %c0_11 = arith.constant 0 : index
      %12 = vector.load %arg6[%c0_10, %c0_11] : memref<16x128xf32, #tpu.memory_space<vmem>>, vector<16x128xf32>
      %c0_12 = arith.constant 0 : index
      %c0_13 = arith.constant 0 : index
      %13 = vector.load %arg5[%c0_12, %c0_13] : memref<1x128xf32, #tpu.memory_space<vmem>>, vector<1x128xf32>
      %14 = vector.broadcast %13 : vector<1x128xf32> to vector<16x128xf32>
      %15 = arith.addf %12, %14 : vector<16x128xf32>
      %c0_14 = arith.constant 0 : index
      %c0_15 = arith.constant 0 : index
      %16 = vector.load %arg6[%c0_14, %c0_15] : memref<16x128xf32, #tpu.memory_space<vmem>>, vector<16x128xf32>
      tpu.vector_store %arg6[%c0_14, %c0_15], %15 {strides = array<i32>} : memref<16x128xf32, #tpu.memory_space<vmem>>, vector<16x128xf32>,
    } else {
    }
    return
  }
  func.func @transform_0(%arg0: i32, %arg1: i32, %arg2: i32) -> (i32, i32) {
    %c0_i32 = arith.constant 0 : i32
    return %arg0, %arg2 : i32, i32
  }
  func.func @transform_1(%arg0: i32, %arg1: i32, %arg2: i32) -> (i32, i32) {
    %c0_i32 = arith.constant 0 : i32
    return %arg2, %arg1 : i32, i32
  }
  func.func @transform_2(%arg0: i32, %arg1: i32, %arg2: i32) -> (i32, i32) {
    %c0_i32 = arith.constant 0 : i32
    %c0_i32_0 = arith.constant 0 : i32
    return %c0_i32, %arg1 : i32, i32
  }
  func.func @transform_3(%arg0: i32, %arg1: i32, %arg2: i32) -> (i32, i32) {
    %c0_i32 = arith.constant 0 : i32
    return %arg0, %arg1 : i32, i32
  }
}

module attributes {stable_mosaic.version = 11 : i64} {
  func.func @_pooled_head_kernel(%arg0: i32, %arg1: memref<2x8x32xf32, #tpu.memory_space<vmem>>, %arg2: memref<32x16xf32, #tpu.memory_space<vmem>>, %arg3: memref<1x16xf32, #tpu.memory_space<vmem>>, %arg4: memref<2x16xf32, #tpu.memory_space<vmem>>) attributes {dimension_semantics = [#tpu.dimension_semantics<arbitrary>], iteration_bounds = array<i64: 1>, scalar_prefetch = 0 : i64, scratch_operands = 0 : i64, tpu.core_type = #tpu.core_type<tc>, window_params = [{pipeline_mode = #tpu.pipeline_mode<synchronous>, transform_indices = @transform_0, window_bounds = array<i64: 2, 8, 32>}, {pipeline_mode = #tpu.pipeline_mode<synchronous>, transform_indices = @transform_1, window_bounds = array<i64: 32, 16>}, {pipeline_mode = #tpu.pipeline_mode<synchronous>, transform_indices = @transform_2, window_bounds = array<i64: 1, 16>}, {pipeline_mode = #tpu.pipeline_mode<synchronous>, transform_indices = @transform_3, window_bounds = array<i64: 2, 16>}]} {
    %c0 = arith.constant 0 : index
    %c0_0 = arith.constant 0 : index
    %c0_1 = arith.constant 0 : index
    %0 = vector.load %arg1[%c0, %c0_0, %c0_1] : memref<2x8x32xf32, #tpu.memory_space<vmem>>, vector<2x8x32xf32>
    %cst = arith.constant dense<0.000000e+00> : vector<2x32xf32>
    %1 = vector.multi_reduction <add>, %0, %cst [1] : vector<2x8x32xf32> to vector<2x32xf32>
    %cst_2 = arith.constant 8.000000e+00 : f32
    %2 = vector.broadcast %cst_2 : f32 to vector<2x32xf32>
    %3 = arith.divf %1, %2 : vector<2x32xf32>
    %c0_3 = arith.constant 0 : index
    %c0_4 = arith.constant 0 : index
    %4 = vector.load %arg2[%c0_3, %c0_4] : memref<32x16xf32, #tpu.memory_space<vmem>>, vector<32x16xf32>
    %cst_5 = arith.constant dense<0.000000e+00> : vector<2x16xf32>
    %5 = tpu.matmul %3, %4, %cst_5 {dimension_numbers = #tpu.dot_dimension_numbers<[1], [0], [0], [1], [0, 0, 1, 1], [], []>} : vector<2x32xf32>, vector<32x16xf32>, vector<2x16xf32> -> vector<2x16xf32>
    %c0_6 = arith.constant 0 : index
    %c0_7 = arith.constant 0 : index
    %6 = vector.load %arg3[%c0_6, %c0_7] : memref<1x16xf32, #tpu.memory_space<vmem>>, vector<1x16xf32>
    %7 = vector.broadcast %6 : vector<1x16xf32> to vector<2x16xf32>
    %8 = arith.addf %5, %7 : vector<2x16xf32>
    %c0_8 = arith.constant 0 : index
    %c0_9 = arith.constant 0 : index
    %9 = vector.load %arg4[%c0_8, %c0_9] : memref<2x16xf32, #tpu.memory_space<vmem>>, vector<2x16xf32>
    tpu.vector_store %arg4[%c0_8, %c0_9], %8 {strides = array<i32>} : memref<2x16xf32, #tpu.memory_space<vmem>>, vector<2x16xf32>,
    return
  }
  func.func @transform_0(%arg0: i32) -> (i32, i32, i32) {
    %c0_i32 = arith.constant 0 : i32
    %c0_i32_0 = arith.constant 0 : i32
    %c0_i32_1 = arith.constant 0 : i32
    %c0_i32_2 = arith.constant 0 : i32
    return %c0_i32, %c0_i32_0, %c0_i32_1 : i32, i32, i32
  }
  func.func @transform_1(%arg0: i32) -> (i32, i32) {
    %c0_i32 = arith.constant 0 : i32
    %c0_i32_0 = arith.constant 0 : i32
    %c0_i32_1 = arith.constant 0 : i32
    return %c0_i32, %c0_i32_0 : i32, i32
  }
  func.func @transform_2(%arg0: i32) -> (i32, i32) {
    %c0_i32 = arith.constant 0 : i32
    %c0_i32_0 = arith.constant 0 : i32
    %c0_i32_1 = arith.constant 0 : i32
    return %c0_i32, %c0_i32_0 : i32, i32
  }
  func.func @transform_3(%arg0: i32) -> (i32, i32) {
    %c0_i32 = arith.constant 0 : i32
    %c0_i32_0 = arith.constant 0 : i32
    %c0_i32_1 = arith.constant 0 : i32
    return %c0_i32, %c0_i32_0 : i32, i32
  }
}

</mosaic_0001>

<bundles_post_ra>
// kernel: transformer_linear_wrapper_forward.7
= control target key start
LH: loop header
LB: loop body
LE: loop exit
PB: predicated region body
PF: predicated region fallthrough
CT: control target
= control target key end

     0   :  { %s352_s6 = smov 0   ;;  %s387_s0 = inlined_call_operand.vmem [shape: bf16[2,8,96], index: 0, kind: input, shape index: {}]   ;;  %s388_s1 = inlined_call_operand.vmem [shape: bf16[2,8,32], index: 1, kind: output, shape index: {}]  }
   0x1 LB: > { %s293_s7 = sadd.s32 4294967295, %s334_s6   ;;  %p297_p0 = scmp.ge.s32.totalorder %s334_s6, 1  ;;  %s334_s6 = sphi %s352_s6, %s11_s6  }
   0x2   : > { %p86_p1 = scmp.lt.s32.totalorder %s334_s6, 3 }
   0x4   : > { %p87_p2 = pnand %p297_p0, %p86_p1 }
   0x5   : > { %p104_p3 = scmp.lt.s32.totalorder (!%p87_p2), %s293_s7, 1  ;;  %s336_s12 = smov (!%p87_p2), 96  }
   0x6   : > { %90 = sbr.rel (%p87_p2) target bundleno = 759 (0x2f7), region = 24  ;;  %s337_s13 = smov (!%p87_p2), 80  }
   0x7   : > { %s338_s14 = smov (!%p87_p2), 112   ;;  %s339_s15 = smov (!%p87_p2), 48  }
   0x8   : > { %s340_s16 = smov (!%p87_p2), 64   ;;  %s341_s17 = smov (!%p87_p2), 16  }
   0xb   : > { %s390_s7 = smov (!%p104_p3, %s293_s7), 1  ;;  %vm119_vm0 = vcmask 130048   ;;  %vm140_vm1 = vcmask 64512   ;;  %vm158_vm2 = vcmask 1043456   ;;  %vm238_vm3 = vcmask 257024  }
   0xc   : > { %s298_s8 = sshll.u32 %s390_s7, 2 }
   0xd   : > { %s107_s11 = scalar_lea.vmem %s387_s0, %s298_s8  ;;  %s111_s20 = scalar_lea.vmem %s388_s1, %s298_s8 }
   0xe   : > { %v113_v0 = vld [vmem:[%s107_s11] sm:$0xf] }
   0xf   : > { %v115_v1 = vunpack.c.l.b16 %v113_v0 }
  0x11   : > { %v116_v2 = vpack.c.b16 %v115_v1, %v115_v1 }
  0x13   : > { %117 = vrot.lane.b32.xlu1 %v116_v2, %s336_s12  ;;  %177 = vrot.lane.b32.xlu0 %v116_v2, %s337_s13 }
  0x1b   : > { %175 = vrot.lane.b32.xlu0 %v116_v2, %s338_s14 }
  0x23   : > { %211 = vrot.lane.b32.xlu0 %v116_v2, %s339_s15 }
  0x2b   : > { %153 = vrot.lane.b32.xlu0 %v116_v2, %s340_s16 }
  0x85   : > { %v118_v3 = vpop.permute.xlu1 %117  ;;  %v178_v4 = vpop.permute.xlu0 %177 }
  0x86   : > { %v124_v5 = vsel %vm119_vm0, %v118_v3, 0  ;;  %v183_v6 = vsel %vm119_vm0, %v178_v4, 0 }
  0x87   : > { %133 = vmatpush.bf16.xpose.msra.mxu0 %v124_v5  ;;  %192 = vmatpush.bf16.xpose.msra.mxu2 %v183_v6 }
  0x8d   : > { %v176_v7 = vpop.permute.xlu0 %175 }
  0x8e   : > { %300 = vmatmul.msk.bf16.vlgmr.msra.gmra.mxu0 %vm119_vm0, %v113_v0  ;;  %302 = vmatmul.msk.bf16.vlgmr.msra.gmra.mxu2 %vm119_vm0, %v176_v7 }
  0x95   : > { %v212_v26 = vpop.permute.xlu0 %211 }
  0x96   : > { %v217_v27 = vsel %vm158_vm2, %v212_v26, 0 }
  0x97   : > { %226 = vmatpush.bf16.msra.mxu3 %v217_v27 }
  0x9d   : > { %v154_v28 = vpop.permute.xlu0 %153 }
  0x9e   : > { %v160_v29 = vsel %vm158_vm2, %v154_v28, 0 }
  0x9f   : > { %169 = vmatpush.bf16.msra.mxu1 %v160_v29 }
 0x10b   : > { %v135_v8 = vpop.f32.mrf.mxu0 }
 0x10c   : > { %v139_v9 = vmul.f32 0.25, %v135_v8 }
 0x10e   : > { %v141_v10 = vsel %vm140_vm1, %v139_v9, -inf }
 0x10f   : > { %142 = vmax.xlane.f32.xlu2 %v141_v10 }
 0x111   : > { %v194_v11 = vpop.f32.mrf.mxu2 }
 0x112   : > { %v198_v12 = vmul.f32 0.25, %v194_v11 }
 0x113   : > { %v137_v13 = vpop.f32.mrf.mxu0 }
 0x114   : > { %v199_v14 = vsel %vm140_vm1, %v198_v12, -inf }
 0x115   : > { %200 = vmax.xlane.f32.xlu1 %v199_v14 }
 0x119   : > { %v196_v15 = vpop.f32.mrf.mxu2 }
 0x182   : > { %v143_v16 = vpop.xlane.xlu2 %142 }
 0x183   : > { %v144_v19 = vsub.f32 %v139_v9, %v143_v16 }
 0x185   : > { %v145_v21 = vmul.f32 1.442695, %v144_v19 }
 0x188   : > { %v201_v17 = vpop.xlane.xlu1 %200 }
 0x189   : > { %v202_v18 = vsub.f32 %v198_v12, %v201_v17 }
 0x18b   : > { %v203_v20 = vmul.f32 1.442695, %v202_v18 }
 0x18d   : > { %320 = vpow2.f32 %v203_v20 }
 0x18e   : > { %322 = vpow2.f32 %v145_v21 }
 0x193   : > { %v321_v22 = vpop.eup %320 }
 0x194   : > { %v205_v23 = vsel %vm140_vm1, %v321_v22, 0.0  ;;  %v323_v24 = vpop.eup %322 }
 0x195   : > { %206 = vadd.xlane.f32.xlu2 %v205_v23  ;;  %v147_v25 = vsel %vm140_vm1, %v323_v24, 0.0 }
 0x19d   : > { %148 = vadd.xlane.f32.xlu2 %v147_v25 }
 0x208   : > { %v207_v30 = vpop.xlane.xlu2 %206 }
 0x209   : > { %324 = vrcp.f32 %v207_v30 }
 0x20f   : > { %v325_v31 = vpop.eup %324 }
 0x210   : > { %v149_v32 = vpop.xlane.xlu2 %148  ;;  %v209_v33 = vmul.f32 %v325_v31, %v321_v22 }
 0x211   : > { %326 = vrcp.f32 %v149_v32 }
 0x212   : > { %v210_v34 = vpack.c.bf16 %v209_v33, %v209_v33 }
 0x214   : > { %303 = vmatmul.msk.bf16.vlgmr.msra.gmra.mxu3 %vm140_vm1, %v210_v34 }
 0x217   : > { %v327_v35 = vpop.eup %326 }
 0x218   : > { %v151_v36 = vmul.f32 %v327_v35, %v323_v24 }
 0x21a   : > { %v152_v37 = vpack.c.bf16 %v151_v36, %v151_v36 }
 0x21c   : > { %301 = vmatmul.msk.bf16.vlgmr.msra.gmra.mxu1 %vm140_vm1, %v152_v37 }
 0x297   : > { %v228_v38 = vpop.f32.mrf.mxu3 }
 0x298   : > { %233 = vrot.lane.b32.xlu2 %v228_v38, %s341_s17 }
 0x299   : > { %v171_v39 = vpop.f32.mrf.mxu1 }
 0x29f   : > { %v230_v40 = vpop.f32.mrf.mxu3 }
 0x2a1   : > { %v173_v41 = vpop.f32.mrf.mxu1 }
 0x2f2   : > { %v234_v42 = vpop.permute.xlu2 %233 }
 0x2f3   : > { %v236_v43 = vsel %vm119_vm0, %v171_v39, %v234_v42 }
 0x2f4   : > { %v237_v44 = vpack.c.bf16 %v236_v43, %v236_v43 }
 0x2f6   : > { %239 = vst.msk [vmem:[%s111_s20] sm:$0xf] %vm238_vm3, %v237_v44 }
 0x2f7 PF: > { %s11_s6 = sadd.s32 1, %s334_s6  }
 0x2f8   : > { %p8_p4 = scmp.ge.s32.totalorder %s11_s6, 4  }
 0x2fa   :  { %10 = sbr.rel (!%p8_p4) target bundleno = 1 (0x1), region = 54 }

// kernel: transformer_linear_wrapper_forward.9
= control target key start
LH: loop header
LB: loop body
LE: loop exit
PB: predicated region body
PF: predicated region fallthrough
CT: control target
= control target key end

     0   :  { %s323_s0 = inlined_call_operand.vmem [shape: bf16[16,128], index: 0, kind: input, shape index: {}]   ;;  %s324_s3 = inlined_call_operand.vmem [shape: f32[1,128], index: 3, kind: input, shape index: {}]   ;;  %s325_s4 = inlined_call_operand.vmem [shape: f32[1,128], index: 4, kind: input, shape index: {}]   ;;  %s326_s2 = inlined_call_operand.vmem [shape: f32[1,128], index: 2, kind: input, shape index: {}]   ;;  %s327_s1 = inlined_call_operand.vmem [shape: bf16[128,128], index: 1, kind: input, shape index: {}]   ;;  %s328_s5 = inlined_call_operand.vmem [shape: bf16[16,128], index: 5, kind: output, shape index: {}]  }
   0x1   :  { %v233_v0 = vld [vmem:[%s323_s0] sm:$0xff]   ;;  %v231_v5 = vld [vmem:[%s327_s1 + $0x38] sm:$0xff]  ;;  %v230_v6 = vld [vmem:[%s327_s1 + $0x30] sm:$0xff] }
   0x2   :  { %v234_v1 = vunpack.c.l.bf16 %v233_v0  ;;  %v281_v3 = vunpack.c.h.bf16 %v233_v0  ;;  %153 = vmatpush.bf16.msra.mxu0 %v231_v5  ;;  %v229_v7 = vld [vmem:[%s327_s1 + $0x28] sm:$0xff]  ;;  %v228_v8 = vld [vmem:[%s327_s1 + $0x20] sm:$0xff]  ;;  %v227_v9 = vld [vmem:[%s327_s1 + $0x18] sm:$0xff] }
   0x3   :  { %v226_v10 = vld [vmem:[%s327_s1 + $0x10] sm:$0xff]  ;;  %v225_v12 = vld [vmem:[%s327_s1 + $0x8] sm:$0xff]  ;;  %v224_v17 = vld [vmem:[%s327_s1] sm:$0xff] }
   0x4   :  { %30 = vadd.xlane.f32.xlu0 %v234_v1  ;;  %v36_v2 = vmul.f32 %v234_v1, %v234_v1  ;;  %v37_v4 = vmul.f32 %v281_v3, %v281_v3  ;;  %v241_v41 = vld [vmem:[%s324_s3] ss:$0 sm:$0xff] }
   0x5   :  { %v242_v47 = vld [vmem:[%s325_s4] ss:$0 sm:$0xff] }
   0x6   :  { %38 = vadd.xlane.f32.xlu1 %v36_v2  ;;  %154 = vmatpush.bf16.msra.mxu0 %v230_v6  ;;  %v243_v53 = vld [vmem:[%s326_s2] ss:$0 sm:$0xff] }
   0xa   :  { %155 = vmatpush.bf16.msra.mxu0 %v229_v7 }
   0xc   :  { %32 = vadd.xlane.f32.xlu0 %v281_v3 }
   0xe   :  { %40 = vadd.xlane.f32.xlu1 %v37_v4  ;;  %156 = vmatpush.bf16.msra.mxu0 %v228_v8 }
  0x12   :  { %157 = vmatpush.bf16.msra.mxu0 %v227_v9 }
  0x16   :  { %158 = vmatpush.bf16.msra.mxu0 %v226_v10 }
  0x1a   :  { %159 = vmatpush.bf16.msra.mxu0 %v225_v12 }
  0x1e   :  { %160 = vmatpush.bf16.msra.mxu0 %v224_v17 }
  0x77   :  { %v31_v11 = vpop.xlane.xlu0 %30 }
  0x78   :  { %v34_v13 = vmul.f32 0.03125, %v31_v11 }
  0x79   :  { %v39_v14 = vpop.xlane.xlu1 %38 }
  0x7a   :  { %v44_v15 = vmul.f32 %v34_v13, %v34_v13  ;;  %v42_v16 = vmul.f32 0.03125, %v39_v14  ;;  %v48_v38 = vsub.f32 %v234_v1, %v34_v13 }
  0x7c   :  { %v46_v18 = vsub.f32 %v42_v16, %v44_v15 }
  0x7e   :  { %v50_v19 = vadd.f32 1e-05, %v46_v18 }
  0x7f   :  { %v33_v20 = vpop.xlane.xlu0 %32 }
  0x80   :  { %244 = vrsqrt.f32 %v50_v19  ;;  %v35_v21 = vmul.f32 0.03125, %v33_v20  ;;  %vm58_vm1 = vweird.f32 %v50_v19 }
  0x81   :  { %v41_v22 = vpop.xlane.xlu1 %40 }
  0x82   :  { %v45_v23 = vmul.f32 %v35_v21, %v35_v21  ;;  %v43_v24 = vmul.f32 0.03125, %v41_v22  ;;  %v49_v43 = vsub.f32 %v281_v3, %v35_v21 }
  0x84   :  { %v47_v25 = vsub.f32 %v43_v24, %v45_v23 }
  0x86   :  { %v245_v26 = vpop.eup %244  ;;  %v51_v27 = vadd.f32 1e-05, %v47_v25 }
  0x87   :  { %v53_v28 = vmul.f32 %v245_v26, %v50_v19  ;;  %vm59_vm0 = vweird.f32 %v245_v26 }
  0x88   :  { %246 = vrsqrt.f32 %v51_v27  ;;  %vm60_vm2 = vmor %vm58_vm1, %vm59_vm0  ;;  %vm68_vm4 = vweird.f32 %v51_v27 }
  0x89   :  { %v54_v29 = vmul.f32 %v245_v26, %v53_v28 }
  0x8b   :  { %v55_v30 = vmul.f32 0.5, %v54_v29 }
  0x8d   :  { %v56_v31 = vsub.f32 1.5, %v55_v30 }
  0x8e   :  { %v247_v32 = vpop.eup %246 }
  0x8f   :  { %v57_v33 = vmul.f32 %v245_v26, %v56_v31  ;;  %v63_v34 = vmul.f32 %v247_v32, %v51_v27  ;;  %vm69_vm3 = vweird.f32 %v247_v32 }
  0x90   :  { %vm70_vm5 = vmor %vm68_vm4, %vm69_vm3 }
  0x91   :  { %v64_v35 = vmul.f32 %v247_v32, %v63_v34  ;;  %v61_v37 = vsel %vm60_vm2, %v245_v26, %v57_v33 }
  0x92   :  { %v72_v40 = vmul.f32 %v61_v37, %v48_v38 }
  0x93   :  { %v65_v36 = vmul.f32 0.5, %v64_v35 }
  0x94   :  { %v78_v46 = vmul.f32 %v241_v41, %v72_v40 }
  0x95   :  { %v66_v39 = vsub.f32 1.5, %v65_v36 }
  0x96   :  { %v84_v49 = vadd.f32 %v242_v47, %v78_v46 }
  0x97   :  { %v67_v42 = vmul.f32 %v247_v32, %v66_v39 }
  0x99   :  { %v71_v44 = vsel %vm70_vm5, %v247_v32, %v67_v42 }
  0x9a   :  { %v73_v45 = vmul.f32 %v71_v44, %v49_v43 }
  0x9c   :  { %v79_v48 = vmul.f32 %v241_v41, %v73_v45 }
  0x9e   :  { %v85_v50 = vadd.f32 %v242_v47, %v79_v48 }
  0xa0   :  { %v86_v51 = vpack.c.bf16 %v85_v50, %v84_v49 }
  0xa2   :  { %161 = vmatmul.bf16.vlgmr.msra.gmra.mxu0 %v86_v51 }
 0x11f   :  { %v162_v52 = vpop.f32.mrf.mxu0 }
 0x120   :  { %v180_v54 = vadd.f32 %v243_v53, %v162_v52 }
 0x122   :  { %v182_v57 = vmax.f32 %v180_v54, 0.0 }
 0x127   :  { %v164_v55 = vpop.f32.mrf.mxu0 }
 0x128   :  { %v181_v56 = vadd.f32 %v243_v53, %v164_v55 }
 0x12a   :  { %v183_v58 = vmax.f32 %v181_v56, 0.0 }
 0x12c   :  { %v239_v59 = vpack.c.bf16 %v183_v58, %v182_v57 }
 0x12e   :  { %240 = vst [vmem:[%s328_s5] sm:$0xff] %v239_v59  }

// kernel: transformer_linear_wrapper_forward.8
= control target key start
LH: loop header
LB: loop body
LE: loop exit
PB: predicated region body
PF: predicated region fallthrough
CT: control target
= control target key end

     0   :  { %s235_s1 = inlined_call_operand.vmem [shape: bf16[128,128], index: 1, kind: input, shape index: {}]   ;;  %s236_s2 = inlined_call_operand.vmem [shape: f32[1,128], index: 2, kind: input, shape index: {}]   ;;  %s237_s0 = inlined_call_operand.vmem [shape: bf16[16,128], index: 0, kind: input, shape index: {}]   ;;  %s238_s3 = inlined_call_operand.vmem [shape: bf16[16,128], index: 3, kind: output, shape index: {}]  }
   0x1   :  { %v175_v0 = vld [vmem:[%s235_s1 + $0x38] sm:$0xff]  ;;  %v174_v1 = vld [vmem:[%s235_s1 + $0x30] sm:$0xff]  ;;  %v173_v2 = vld [vmem:[%s235_s1 + $0x28] sm:$0xff] }
   0x2   :  { %94 = vmatpush.bf16.msra.mxu0 %v175_v0  ;;  %v172_v3 = vld [vmem:[%s235_s1 + $0x20] sm:$0xff]  ;;  %v171_v4 = vld [vmem:[%s235_s1 + $0x18] sm:$0xff]  ;;  %v170_v5 = vld [vmem:[%s235_s1 + $0x10] sm:$0xff] }
   0x3   :  { %v169_v6 = vld [vmem:[%s235_s1 + $0x8] sm:$0xff]  ;;  %v168_v7 = vld [vmem:[%s235_s1] sm:$0xff] }
   0x4   :  { %v167_v8 = vld [vmem:[%s237_s0] sm:$0xff] }
   0x5   :  { %v181_v10 = vld [vmem:[%s236_s2] ss:$0 sm:$0xff] }
   0x6   :  { %95 = vmatpush.bf16.msra.mxu0 %v174_v1 }
   0xa   :  { %96 = vmatpush.bf16.msra.mxu0 %v173_v2 }
   0xe   :  { %97 = vmatpush.bf16.msra.mxu0 %v172_v3 }
  0x12   :  { %98 = vmatpush.bf16.msra.mxu0 %v171_v4 }
  0x16   :  { %99 = vmatpush.bf16.msra.mxu0 %v170_v5 }
  0x1a   :  { %100 = vmatpush.bf16.msra.mxu0 %v169_v6 }
  0x1e   :  { %101 = vmatpush.bf16.msra.mxu0 %v168_v7 }
  0x21   :  { %102 = vmatmul.bf16.vlgmr.msra.gmra.mxu0 %v167_v8 }
  0x9e   :  { %v103_v9 = vpop.f32.mrf.mxu0 }
  0x9f   :  { %v121_v12 = vadd.f32 %v181_v10, %v103_v9 }
  0xa6   :  { %v105_v11 = vpop.f32.mrf.mxu0 }
  0xa7   :  { %v122_v13 = vadd.f32 %v181_v10, %v105_v11 }
  0xa9   :  { %v179_v14 = vpack.c.bf16 %v122_v13, %v121_v12 }
  0xab   :  { %180 = vst [vmem:[%s238_s3] sm:$0xff] %v179_v14  }

// kernel: transformer_linear_wrapper_forward.6
= control target key start
LH: loop header
LB: loop body
LE: loop exit
PB: predicated region body
PF: predicated region fallthrough
CT: control target
= control target key end

     0   :  { %s321_s0 = inlined_call_operand.vmem [shape: bf16[16,128], index: 0, kind: input, shape index: {}]   ;;  %s322_s3 = inlined_call_operand.vmem [shape: f32[1,128], index: 3, kind: input, shape index: {}]   ;;  %s323_s4 = inlined_call_operand.vmem [shape: f32[1,128], index: 4, kind: input, shape index: {}]   ;;  %s324_s2 = inlined_call_operand.vmem [shape: f32[1,128], index: 2, kind: input, shape index: {}]   ;;  %s325_s1 = inlined_call_operand.vmem [shape: bf16[128,128], index: 1, kind: input, shape index: {}]   ;;  %s326_s5 = inlined_call_operand.vmem [shape: bf16[16,128], index: 5, kind: output, shape index: {}]  }
   0x1   :  { %v231_v0 = vld [vmem:[%s321_s0] sm:$0xff]   ;;  %v229_v5 = vld [vmem:[%s325_s1 + $0x38] sm:$0xff]  ;;  %v228_v6 = vld [vmem:[%s325_s1 + $0x30] sm:$0xff] }
   0x2   :  { %v232_v1 = vunpack.c.l.bf16 %v231_v0  ;;  %v279_v3 = vunpack.c.h.bf16 %v231_v0  ;;  %153 = vmatpush.bf16.msra.mxu0 %v229_v5  ;;  %v227_v7 = vld [vmem:[%s325_s1 + $0x28] sm:$0xff]  ;;  %v226_v8 = vld [vmem:[%s325_s1 + $0x20] sm:$0xff]  ;;  %v225_v9 = vld [vmem:[%s325_s1 + $0x18] sm:$0xff] }
   0x3   :  { %v224_v10 = vld [vmem:[%s325_s1 + $0x10] sm:$0xff]  ;;  %v223_v12 = vld [vmem:[%s325_s1 + $0x8] sm:$0xff]  ;;  %v222_v17 = vld [vmem:[%s325_s1] sm:$0xff] }
   0x4   :  { %30 = vadd.xlane.f32.xlu0 %v232_v1  ;;  %v36_v2 = vmul.f32 %v232_v1, %v232_v1  ;;  %v37_v4 = vmul.f32 %v279_v3, %v279_v3  ;;  %v239_v41 = vld [vmem:[%s322_s3] ss:$0 sm:$0xff] }
   0x5   :  { %v240_v47 = vld [vmem:[%s323_s4] ss:$0 sm:$0xff] }
   0x6   :  { %38 = vadd.xlane.f32.xlu1 %v36_v2  ;;  %154 = vmatpush.bf16.msra.mxu0 %v228_v6  ;;  %v241_v53 = vld [vmem:[%s324_s2] ss:$0 sm:$0xff] }
   0xa   :  { %155 = vmatpush.bf16.msra.mxu0 %v227_v7 }
   0xc   :  { %32 = vadd.xlane.f32.xlu0 %v279_v3 }
   0xe   :  { %40 = vadd.xlane.f32.xlu1 %v37_v4  ;;  %156 = vmatpush.bf16.msra.mxu0 %v226_v8 }
  0x12   :  { %157 = vmatpush.bf16.msra.mxu0 %v225_v9 }
  0x16   :  { %158 = vmatpush.bf16.msra.mxu0 %v224_v10 }
  0x1a   :  { %159 = vmatpush.bf16.msra.mxu0 %v223_v12 }
  0x1e   :  { %160 = vmatpush.bf16.msra.mxu0 %v222_v17 }
  0x77   :  { %v31_v11 = vpop.xlane.xlu0 %30 }
  0x78   :  { %v34_v13 = vmul.f32 0.03125, %v31_v11 }
  0x79   :  { %v39_v14 = vpop.xlane.xlu1 %38 }
  0x7a   :  { %v44_v15 = vmul.f32 %v34_v13, %v34_v13  ;;  %v42_v16 = vmul.f32 0.03125, %v39_v14  ;;  %v48_v38 = vsub.f32 %v232_v1, %v34_v13 }
  0x7c   :  { %v46_v18 = vsub.f32 %v42_v16, %v44_v15 }
  0x7e   :  { %v50_v19 = vadd.f32 1e-05, %v46_v18 }
  0x7f   :  { %v33_v20 = vpop.xlane.xlu0 %32 }
  0x80   :  { %242 = vrsqrt.f32 %v50_v19  ;;  %v35_v21 = vmul.f32 0.03125, %v33_v20  ;;  %vm58_vm1 = vweird.f32 %v50_v19 }
  0x81   :  { %v41_v22 = vpop.xlane.xlu1 %40 }
  0x82   :  { %v45_v23 = vmul.f32 %v35_v21, %v35_v21  ;;  %v43_v24 = vmul.f32 0.03125, %v41_v22  ;;  %v49_v43 = vsub.f32 %v279_v3, %v35_v21 }
  0x84   :  { %v47_v25 = vsub.f32 %v43_v24, %v45_v23 }
  0x86   :  { %v243_v26 = vpop.eup %242  ;;  %v51_v27 = vadd.f32 1e-05, %v47_v25 }
  0x87   :  { %v53_v28 = vmul.f32 %v243_v26, %v50_v19  ;;  %vm59_vm0 = vweird.f32 %v243_v26 }
  0x88   :  { %244 = vrsqrt.f32 %v51_v27  ;;  %vm60_vm2 = vmor %vm58_vm1, %vm59_vm0  ;;  %vm68_vm4 = vweird.f32 %v51_v27 }
  0x89   :  { %v54_v29 = vmul.f32 %v243_v26, %v53_v28 }
  0x8b   :  { %v55_v30 = vmul.f32 0.5, %v54_v29 }
  0x8d   :  { %v56_v31 = vsub.f32 1.5, %v55_v30 }
  0x8e   :  { %v245_v32 = vpop.eup %244 }
  0x8f   :  { %v57_v33 = vmul.f32 %v243_v26, %v56_v31  ;;  %v63_v34 = vmul.f32 %v245_v32, %v51_v27  ;;  %vm69_vm3 = vweird.f32 %v245_v32 }
  0x90   :  { %vm70_vm5 = vmor %vm68_vm4, %vm69_vm3 }
  0x91   :  { %v64_v35 = vmul.f32 %v245_v32, %v63_v34  ;;  %v61_v37 = vsel %vm60_vm2, %v243_v26, %v57_v33 }
  0x92   :  { %v72_v40 = vmul.f32 %v61_v37, %v48_v38 }
  0x93   :  { %v65_v36 = vmul.f32 0.5, %v64_v35 }
  0x94   :  { %v78_v46 = vmul.f32 %v239_v41, %v72_v40 }
  0x95   :  { %v66_v39 = vsub.f32 1.5, %v65_v36 }
  0x96   :  { %v84_v49 = vadd.f32 %v240_v47, %v78_v46 }
  0x97   :  { %v67_v42 = vmul.f32 %v245_v32, %v66_v39 }
  0x99   :  { %v71_v44 = vsel %vm70_vm5, %v245_v32, %v67_v42 }
  0x9a   :  { %v73_v45 = vmul.f32 %v71_v44, %v49_v43 }
  0x9c   :  { %v79_v48 = vmul.f32 %v239_v41, %v73_v45 }
  0x9e   :  { %v85_v50 = vadd.f32 %v240_v47, %v79_v48 }
  0xa0   :  { %v86_v51 = vpack.c.bf16 %v85_v50, %v84_v49 }
  0xa2   :  { %161 = vmatmul.bf16.vlgmr.msra.gmra.mxu0 %v86_v51 }
 0x11f   :  { %v162_v52 = vpop.f32.mrf.mxu0 }
 0x120   :  { %v180_v55 = vadd.f32 %v241_v53, %v162_v52 }
 0x127   :  { %v164_v54 = vpop.f32.mrf.mxu0 }
 0x128   :  { %v181_v56 = vadd.f32 %v241_v53, %v164_v54 }
 0x12a   :  { %v237_v57 = vpack.c.bf16 %v181_v56, %v180_v55 }
 0x12c   :  { %238 = vst [vmem:[%s326_s5] sm:$0xff] %v237_v57  }

// kernel: transformer_linear_wrapper_forward.10
= control target key start
LH: loop header
LB: loop body
LE: loop exit
PB: predicated region body
PF: predicated region fallthrough
CT: control target
= control target key end

     0   :  { %s232_s1 = inlined_call_operand.vmem [shape: bf16[128,128], index: 1, kind: input, shape index: {}]   ;;  %s233_s2 = inlined_call_operand.vmem [shape: f32[1,128], index: 2, kind: input, shape index: {}]   ;;  %s234_s0 = inlined_call_operand.vmem [shape: bf16[16,128], index: 0, kind: input, shape index: {}]   ;;  %s235_s3 = inlined_call_operand.vmem [shape: f32[16,128], index: 3, kind: output, shape index: {}]  }
   0x1   :  { %v173_v0 = vld [vmem:[%s232_s1 + $0x38] sm:$0xff]  ;;  %v172_v1 = vld [vmem:[%s232_s1 + $0x30] sm:$0xff]  ;;  %v171_v2 = vld [vmem:[%s232_s1 + $0x28] sm:$0xff] }
   0x2   :  { %94 = vmatpush.bf16.msra.mxu0 %v173_v0  ;;  %v170_v3 = vld [vmem:[%s232_s1 + $0x20] sm:$0xff]  ;;  %v169_v4 = vld [vmem:[%s232_s1 + $0x18] sm:$0xff]  ;;  %v168_v5 = vld [vmem:[%s232_s1 + $0x10] sm:$0xff] }
   0x3   :  { %v167_v6 = vld [vmem:[%s232_s1 + $0x8] sm:$0xff]  ;;  %v166_v7 = vld [vmem:[%s232_s1] sm:$0xff] }
   0x4   :  { %v165_v8 = vld [vmem:[%s234_s0] sm:$0xff] }
   0x5   :  { %v175_v9 = vld [vmem:[%s233_s2] ss:$0 sm:$0xff] }
   0x6   :  { %95 = vmatpush.bf16.msra.mxu0 %v172_v1 }
   0xa   :  { %96 = vmatpush.bf16.msra.mxu0 %v171_v2 }
   0xe   :  { %97 = vmatpush.bf16.msra.mxu0 %v170_v3 }
  0x12   :  { %98 = vmatpush.bf16.msra.mxu0 %v169_v4 }
  0x16   :  { %99 = vmatpush.bf16.msra.mxu0 %v168_v5 }
  0x1a   :  { %100 = vmatpush.bf16.msra.mxu0 %v167_v6 }
  0x1e   :  { %101 = vmatpush.bf16.msra.mxu0 %v166_v7 }
  0x21   :  { %102 = vmatmul.bf16.vlgmr.msra.gmra.mxu0 %v165_v8 }
  0x9e   :  { %v103_v10 = vpop.f32.mrf.mxu0 }
  0x9f   :  { %v121_v11 = vadd.f32 %v175_v9, %v103_v10 }
  0xa1   :  { %123 = vst [vmem:[%s235_s3] sm:$0xff] %v121_v11 }
  0xa6   :  { %v105_v12 = vpop.f32.mrf.mxu0 }
  0xa7   :  { %v122_v13 = vadd.f32 %v175_v9, %v105_v12 }
  0xa9   :  { %124 = vst [vmem:[%s235_s3 + $0x8] sm:$0xff] %v122_v13 }

// kernel: transformer_linear_wrapper_forward.11
= control target key start
LH: loop header
LB: loop body
LE: loop exit
PB: predicated region body
PF: predicated region fallthrough
CT: control target
= control target key end

     0   :  { %vm17_vm0 = vcmask 261120   ;;  %v125_v4 = vmov 8.0   ;;  %s174_s0 = inlined_call_operand.vmem [shape: f32[2,8,32], index: 0, kind: input, shape index: {}]   ;;  %s175_s1 = inlined_call_operand.vmem [shape: f32[32,16], index: 1, kind: input, shape index: {}]   ;;  %s176_s2 = inlined_call_operand.vmem [shape: f32[1,16], index: 2, kind: input, shape index: {}]   ;;  %s177_s3 = inlined_call_operand.hbm [shape: f32[2,16], index: 3, kind: output, shape index: {}]  }
   0x1   :  { %v44_v0 = vld [vmem:[%s175_s1 + $0x18] sm:$0xff]  ;;  %v43_v1 = vld [vmem:[%s175_s1 + $0x10] sm:$0xff]  ;;  %v15_v2 = vld [vmem:[%s174_s0] sm:$0xff]  ;;  %97 = vrcp.f32 %v125_v4 }
   0x2   :  { %67 = vmatpush.msra.mxu0 %v44_v0  ;;  %v16_v3 = vld [vmem:[%s174_s0 + $0x8] sm:$0xff]  ;;  %v18_v6 = vsel %vm17_vm0, %v15_v2, 0.0 }
   0x3   :  { %v42_v5 = vld [vmem:[%s175_s1 + $0x8] sm:$0xff]  ;;  %v25_v7 = vsel %vm17_vm0, %v16_v3, 0.0  ;;  %v19_v8 = vrot.slane %v18_v6, 4 }
   0x4   :  { %68 = vmatpush.msra.mxu0 %v43_v1  ;;  %v26_v9 = vrot.slane %v25_v7, 4 }
   0x5   :  { %8 = vsyncpa [#allocation3], 0  ;;  %v41_v10 = vld [vmem:[%s175_s1] sm:$0xff]  ;;  %v20_v11 = vadd.f32 %v19_v8, %v18_v6  ;;  %vm51_vm2 = vcmask 1041409   ;;  %s126_s24 = smov [#allocation2]   ;;  %s84_s28 = sshll.u32 %s177_s3, 4  ;;  %s85_s28 = int_to_ptr.hbm [resolvable:$true] %s84_s28 }
   0x6   :  { %69 = vmatpush.msra.mxu0 %v42_v5  ;;  %v27_v12 = vadd.f32 %v26_v9, %v25_v7  ;;  %v96_v30 = vld [vmem:[%s176_s2] ss:$0 sm:$0xff]  ;;  %s82_s25 = sshll.u32 %s126_s24, 4  ;;  %vm75_vm3 = vcmask 123904   ;;  %s83_s25 = int_to_ptr.vmem [resolvable:$true] %s82_s25 }
   0x7   :  { %v98_v13 = vpop.eup %97  ;;  %v21_v14 = vrot.slane %v20_v11, 2 }
   0x8   :  { %70 = vmatpush.msra.mxu0 %v41_v10  ;;  %v28_v15 = vrot.slane %v27_v12, 2  ;;  %v33_v16 = vmul.f32 8.0, %v98_v13  ;;  %vm37_vm1 = vweird.f32 %v98_v13 }
   0x9   :  { %v22_v17 = vadd.f32 %v21_v14, %v20_v11 }
   0xa   :  { %v29_v18 = vadd.f32 %v28_v15, %v27_v12  ;;  %v34_v19 = vsub.f32 1.0, %v33_v16 }
   0xb   :  { %v23_v20 = vrot.slane %v22_v17, 1 }
   0xc   :  { %v30_v21 = vrot.slane %v29_v18, 1  ;;  %v35_v22 = vmul.f32 %v98_v13, %v34_v19 }
   0xd   :  { %v24_v23 = vadd.f32 %v23_v20, %v22_v17 }
   0xe   :  { %v31_v24 = vadd.f32 %v30_v21, %v29_v18  ;;  %v36_v25 = vadd.f32 %v98_v13, %v35_v22 }
  0x10   :  { %v38_v26 = vsel %vm37_vm1, %v98_v13, %v36_v25 }
  0x11   :  { %v39_v27 = vmul.f32 %v38_v26, %v24_v23  ;;  %v40_v28 = vmul.f32 %v38_v26, %v31_v24 }
  0x13   :  { %v52_v29 = vsel %vm51_vm2, %v40_v28, %v39_v27 }
  0x14   :  { %93 = vmatmul.msk.f32.vlgmr.msra.gmra.mxu0 %vm17_vm0, %v52_v29 }
  0x91   :  { %v72_v31 = vpop.f32.mrf.mxu0 }
  0x92   :  { %v73_v32 = vadd.f32 %v96_v30, %v72_v31 }
  0x94   :  { %76 = vst.msk [vmem:[#allocation2] sm:$0x3] %vm75_vm3, %v73_v32 }
  0x95   :  { %87 = dma.vmem_to_hbm [thread:$0]  %s83_s25, 32, %s85_s28, [#allocation3]  }
  0x96   :  { %123 = dma.done.wait [#allocation3], 32  }
  0x97   :  { %124 = vsyncadd [#allocation3], 4294967264 }
  0x98   :  { %92 = vsyncpa [#allocation3], 1 }

</bundles_post_ra>
